<compile_context>
chip_gen: v7x
topology: tpu7x:2x2x1
jax: 0.10.0
libtpu: 0.0.40
codegen_flags: <defaults>
</compile_context>

<pallas_src>
import jax
import jax.numpy as jnp
from jax.experimental import pallas as pl
from jax.experimental.pallas import tpu as pltpu


def _layernorm(x, gamma, beta, eps=1e-5):
    # x: (N, D), gamma/beta: (1, D).  Stats in f32 (x is f32 here).
    mean = jnp.mean(x, axis=-1, keepdims=True)
    var = jnp.mean(jnp.square(x - mean), axis=-1, keepdims=True)
    return (x - mean) * jax.lax.rsqrt(var + eps) * gamma + beta


def _gelu(x):
    # exact (erf-based) GELU, matching nn.GELU() default
    inv_sqrt2 = jnp.float32(0.7071067811865476)
    return 0.5 * x * (1.0 + jax.lax.erf(x * inv_sqrt2))


def mixer_kernel(x_ref,
                 g1_ref, b1_ref,          # norm1 gamma/beta              (1, D)
                 pw1t_ref, pb1t_ref,      # patch  mixer lin1  (Hp, P) / (Hp, 1)
                 pw2t_ref, pb2t_ref,      # patch  mixer lin2  (P, Hp) / (P, 1)
                 g2_ref, b2_ref,          # norm2 gamma/beta              (1, D)
                 cw1_ref, cb1_ref,        # channel mixer lin1 (D, Hc) / (1, Hc)
                 cw2_ref, cb2_ref,        # channel mixer lin2 (Hc, D) / (1, D)
                 o_ref):
    bt, P, D = x_ref.shape
    Hp = pw1t_ref.shape[0]

    x3 = x_ref[...]                       # (bt, P, D)
    x2 = x3.reshape(bt * P, D)            # leading-dim merge only (lane dim kept)

    # ---------------- token (patch) mixing branch ----------------
    y2 = _layernorm(x2, g1_ref[...], b1_ref[...])          # (bt*P, D)
    y3 = y2.reshape(bt, P, D)

    # Weights broadcast over the small per-step batch; D stays on lanes so the
    # two transposes of the naive formulation disappear.
    w1b = jnp.broadcast_to(pw1t_ref[...], (bt, Hp, P))     # (bt, Hp, P)
    w2b = jnp.broadcast_to(pw2t_ref[...], (bt, P, Hp))     # (bt, P, Hp)

    h = _gelu(jnp.einsum('bhp,bpd->bhd', w1b, y3,
                         preferred_element_type=jnp.float32)
              + pb1t_ref[...])                             # (bt, Hp, D)
    tmix = jnp.einsum('bph,bhd->bpd', w2b, h,
                      preferred_element_type=jnp.float32) + pb2t_ref[...]  # (bt, P, D)

    x1_3 = x3 + tmix                                       # residual, (bt, P, D)
    x1 = x1_3.reshape(bt * P, D)

    # ---------------- channel mixing branch ----------------
    z = _layernorm(x1, g2_ref[...], b2_ref[...])           # (bt*P, D)
    h2 = _gelu(jnp.dot(z, cw1_ref[...],
                       preferred_element_type=jnp.float32) + cb1_ref[...])   # (bt*P, Hc)
    cmix = jnp.dot(h2, cw2_ref[...],
                   preferred_element_type=jnp.float32) + cb2_ref[...]        # (bt*P, D)

    o_ref[...] = (x1 + cmix).reshape(bt, P, D)


def mlp_mixer_layer(x, params, *, block_batch=None):
    """x: (B, P, D) float32.  Token-mix weights in PyTorch (out,in) layout,
    channel-mix weights pre-transposed to (in,out)."""
    B, P, D = x.shape
    Hp = params["pw1_t"].shape[0]
    Hc = params["cw1"].shape[1]

    # Batch elements per grid step: as large as VMEM comfortably allows.
    # (On v7x keep B // bt >= 2 so the parallel axis shards across both TCs.)
    bt = block_batch if block_batch is not None else min(B, 16)
    bt = max(1, min(bt, B))
    while B % bt:
        bt -= 1
    grid = (B // bt,)

    def full(shape):
        nd = len(shape)
        return pl.BlockSpec(shape, lambda b, _nd=nd: (0,) * _nd)

    in_specs = [
        pl.BlockSpec((bt, P, D), lambda b: (b, 0, 0)),   # x
        full((1, D)), full((1, D)),                      # norm1
        full((Hp, P)), full((Hp, 1)),                    # patch mixer lin1 (out,in)
        full((P, Hp)), full((P, 1)),                     # patch mixer lin2 (out,in)
        full((1, D)), full((1, D)),                      # norm2
        full((D, Hc)), full((1, Hc)),                    # channel mixer lin1 (in,out)
        full((Hc, D)), full((1, D)),                     # channel mixer lin2 (in,out)
    ]

    return pl.pallas_call(
        mixer_kernel,
        out_shape=jax.ShapeDtypeStruct((B, P, D), jnp.float32),
        grid_spec=pltpu.PrefetchScalarGridSpec(
            num_scalar_prefetch=0,
            grid=grid,
            in_specs=in_specs,
            out_specs=pl.BlockSpec((bt, P, D), lambda b: (b, 0, 0)),
        ),
        compiler_params=pltpu.CompilerParams(
            dimension_semantics=("parallel",)),
    )(x,
      params["g1"], params["bn1"],
      params["pw1_t"], params["pb1_t"],
      params["pw2_t"], params["pb2_t"],
      params["g2"], params["bn2"],
      params["cw1"], params["cb1"],
      params["cw2"], params["cb2"])


def reference_mixer(x, p):
    """Plain-JAX reference of the PyTorch forward (eval mode)."""
    def ln(v, g, b):
        m = jnp.mean(v, axis=-1, keepdims=True)
        var = jnp.mean(jnp.square(v - m), axis=-1, keepdims=True)
        return (v - m) * jax.lax.rsqrt(var + 1e-5) * g + b

    def gelu(v):
        return 0.5 * v * (1.0 + jax.lax.erf(v * 0.7071067811865476))

    y = ln(x, p["g1"], p["bn1"])                                 # (B, P, D)
    # patch_mixer(norm1(x).transpose(1,2)):  pw1_t / pw2_t are PyTorch (out,in)
    h = gelu(jnp.einsum('bpd,hp->bdh', y, p["pw1_t"]) + p["pb1_t"][:, 0])   # (B, D, Hp)
    t = jnp.einsum('bdh,ph->bdp', h, p["pw2_t"]) + p["pb2_t"][:, 0]         # (B, D, P)
    x1 = x + jnp.swapaxes(t, 1, 2)
    z = ln(x1, p["g2"], p["bn2"])
    h2 = gelu(z @ p["cw1"] + p["cb1"])
    return x1 + (h2 @ p["cw2"] + p["cb2"])


if __name__ == "__main__":
    # Small config consistent with the module:
    #   num_patches = 8, embed_dims = 32, patch_expansion = 0.5, channel_expansion = 4.0
    B, P, D = 2, 8, 32
    Hp = int(0.5 * D)    # patch_mix_dims   = 16
    Hc = int(4.0 * D)    # channel_mix_dims = 128

    key = jax.random.PRNGKey(0)
    ks = jax.random.split(key, 16)

    def init(k, shape, scale=0.05):
        return (scale * jax.random.normal(k, shape)).astype(jnp.float32)

    # Token-mix weights kept in native PyTorch (out, in) layout -> no transposes
    # needed in the kernel.  Channel-mix weights pre-transposed to (in, out).
    params = {
        "g1":    jnp.ones((1, D), jnp.float32),
        "bn1":   jnp.zeros((1, D), jnp.float32),
        "pw1_t": init(ks[0], (Hp, P)),      # Linear(P -> Hp).weight, (out, in)
        "pb1_t": init(ks[1], (Hp, 1)),      # bias as column
        "pw2_t": init(ks[2], (P, Hp)),      # Linear(Hp -> P).weight, (out, in)
        "pb2_t": init(ks[3], (P, 1)),
        "g2":    jnp.ones((1, D), jnp.float32),
        "bn2":   jnp.zeros((1, D), jnp.float32),
        "cw1":   init(ks[4], (D, Hc)),      # Linear(D -> Hc).weight.T, (in, out)
        "cb1":   init(ks[5], (1, Hc)),
        "cw2":   init(ks[6], (Hc, D)),      # Linear(Hc -> D).weight.T, (in, out)
        "cb2":   init(ks[7], (1, D)),
    }

    x = jax.random.normal(ks[8], (B, P, D), jnp.float32)

    out = mlp_mixer_layer(x, params)
    out = jax.block_until_ready(out)

    ref = reference_mixer(x, params)
    assert out.shape == (B, P, D)
    assert jnp.allclose(out, ref, rtol=1e-4, atol=1e-4), "mismatch vs reference"

    print("KERNEL_OK")
</pallas_src>

<mosaic_0001>
module attributes {stable_mosaic.version = 11 : i64} {
  func.func @mixer_kernel(%arg0: i32, %arg1: memref<2x8x32xf32, #tpu.memory_space<vmem>>, %arg2: memref<1x32xf32, #tpu.memory_space<vmem>>, %arg3: memref<1x32xf32, #tpu.memory_space<vmem>>, %arg4: memref<16x8xf32, #tpu.memory_space<vmem>>, %arg5: memref<16x1xf32, #tpu.memory_space<vmem>>, %arg6: memref<8x16xf32, #tpu.memory_space<vmem>>, %arg7: memref<8x1xf32, #tpu.memory_space<vmem>>, %arg8: memref<1x32xf32, #tpu.memory_space<vmem>>, %arg9: memref<1x32xf32, #tpu.memory_space<vmem>>, %arg10: memref<32x128xf32, #tpu.memory_space<vmem>>, %arg11: memref<1x128xf32, #tpu.memory_space<vmem>>, %arg12: memref<128x32xf32, #tpu.memory_space<vmem>>, %arg13: memref<1x32xf32, #tpu.memory_space<vmem>>, %arg14: memref<2x8x32xf32, #tpu.memory_space<vmem>>) attributes {dimension_semantics = [#tpu.dimension_semantics<parallel>], iteration_bounds = array<i64: 1>, scalar_prefetch = 0 : i64, scratch_operands = 0 : i64, tpu.core_type = #tpu.core_type<tc>, window_params = [{transform_indices = @transform_0, window_bounds = array<i64: 2, 8, 32>}, {pipeline_mode = #tpu.pipeline_mode<synchronous>, transform_indices = @transform_1, window_bounds = array<i64: 1, 32>}, {pipeline_mode = #tpu.pipeline_mode<synchronous>, transform_indices = @transform_2, window_bounds = array<i64: 1, 32>}, {pipeline_mode = #tpu.pipeline_mode<synchronous>, transform_indices = @transform_3, window_bounds = array<i64: 16, 8>}, {pipeline_mode = #tpu.pipeline_mode<synchronous>, transform_indices = @transform_4, window_bounds = array<i64: 16, 1>}, {pipeline_mode = #tpu.pipeline_mode<synchronous>, transform_indices = @transform_5, window_bounds = array<i64: 8, 16>}, {pipeline_mode = #tpu.pipeline_mode<synchronous>, transform_indices = @transform_6, window_bounds = array<i64: 8, 1>}, {pipeline_mode = #tpu.pipeline_mode<synchronous>, transform_indices = @transform_7, window_bounds = array<i64: 1, 32>}, {pipeline_mode = #tpu.pipeline_mode<synchronous>, transform_indices = @transform_8, window_bounds = array<i64: 1, 32>}, {pipeline_mode = #tpu.pipeline_mode<synchronous>, transform_indices = @transform_9, window_bounds = array<i64: 32, 128>}, {pipeline_mode = #tpu.pipeline_mode<synchronous>, transform_indices = @transform_10, window_bounds = array<i64: 1, 128>}, {pipeline_mode = #tpu.pipeline_mode<synchronous>, transform_indices = @transform_11, window_bounds = array<i64: 128, 32>}, {pipeline_mode = #tpu.pipeline_mode<synchronous>, transform_indices = @transform_12, window_bounds = array<i64: 1, 32>}, {transform_indices = @transform_13, window_bounds = array<i64: 2, 8, 32>}]} {
    %c0 = arith.constant 0 : index
    %c0_0 = arith.constant 0 : index
    %c0_1 = arith.constant 0 : index
    %0 = vector.load %arg1[%c0, %c0_0, %c0_1] : memref<2x8x32xf32, #tpu.memory_space<vmem>>, vector<2x8x32xf32>
    %1 = vector.shape_cast %0 : vector<2x8x32xf32> to vector<16x32xf32>
    %c0_2 = arith.constant 0 : index
    %c0_3 = arith.constant 0 : index
    %2 = vector.load %arg2[%c0_2, %c0_3] : memref<1x32xf32, #tpu.memory_space<vmem>>, vector<1x32xf32>
    %c0_4 = arith.constant 0 : index
    %c0_5 = arith.constant 0 : index
    %3 = vector.load %arg3[%c0_4, %c0_5] : memref<1x32xf32, #tpu.memory_space<vmem>>, vector<1x32xf32>
    %cst = arith.constant dense<0.000000e+00> : vector<16xf32>
    %4 = vector.multi_reduction <add>, %1, %cst [1] : vector<16x32xf32> to vector<16xf32>
    %5 = vector.shape_cast %4 : vector<16xf32> to vector<16x1xf32>
    %cst_6 = arith.constant 3.200000e+01 : f32
    %6 = vector.broadcast %cst_6 : f32 to vector<16x1xf32>
    %7 = arith.divf %5, %6 : vector<16x1xf32>
    %8 = vector.broadcast %7 : vector<16x1xf32> to vector<16x32xf32>
    %9 = arith.subf %1, %8 : vector<16x32xf32>
    %10 = arith.mulf %9, %9 : vector<16x32xf32>
    %cst_7 = arith.constant dense<0.000000e+00> : vector<16xf32>
    %11 = vector.multi_reduction <add>, %10, %cst_7 [1] : vector<16x32xf32> to vector<16xf32>
    %12 = vector.shape_cast %11 : vector<16xf32> to vector<16x1xf32>
    %cst_8 = arith.constant 3.200000e+01 : f32
    %13 = vector.broadcast %cst_8 : f32 to vector<16x1xf32>
    %14 = arith.divf %12, %13 : vector<16x1xf32>
    %15 = vector.broadcast %7 : vector<16x1xf32> to vector<16x32xf32>
    %16 = arith.subf %1, %15 : vector<16x32xf32>
    %cst_9 = arith.constant 9.99999974E-6 : f32
    %17 = vector.broadcast %cst_9 : f32 to vector<16x1xf32>
    %18 = arith.addf %14, %17 : vector<16x1xf32>
    %19 = math.rsqrt %18 : vector<16x1xf32>
    %20 = vector.broadcast %19 : vector<16x1xf32> to vector<16x32xf32>
    %21 = arith.mulf %16, %20 : vector<16x32xf32>
    %22 = vector.broadcast %2 : vector<1x32xf32> to vector<16x32xf32>
    %23 = arith.mulf %21, %22 : vector<16x32xf32>
    %24 = vector.broadcast %3 : vector<1x32xf32> to vector<16x32xf32>
    %25 = arith.addf %23, %24 : vector<16x32xf32>
    %26 = vector.shape_cast %25 : vector<16x32xf32> to vector<2x8x32xf32>
    %c0_10 = arith.constant 0 : index
    %c0_11 = arith.constant 0 : index
    %27 = vector.load %arg4[%c0_10, %c0_11] : memref<16x8xf32, #tpu.memory_space<vmem>>, vector<16x8xf32>
    %28 = vector.shape_cast %27 : vector<16x8xf32> to vector<1x16x8xf32>
    %29 = vector.broadcast %28 : vector<1x16x8xf32> to vector<2x16x8xf32>
    %c0_12 = arith.constant 0 : index
    %c0_13 = arith.constant 0 : index
    %30 = vector.load %arg6[%c0_12, %c0_13] : memref<8x16xf32, #tpu.memory_space<vmem>>, vector<8x16xf32>
    %31 = vector.shape_cast %30 : vector<8x16xf32> to vector<1x8x16xf32>
    %32 = vector.broadcast %31 : vector<1x8x16xf32> to vector<2x8x16xf32>
    "tpu.trace_start"() <{level = 10 : i32, message = "bhp,bpd->bhd"}> : () -> ()
    %cst_14 = arith.constant dense<0.000000e+00> : vector<2x16x32xf32>
    %33 = tpu.matmul %29, %26, %cst_14 {dimension_numbers = #tpu.dot_dimension_numbers<[2], [1], [1], [2], [0, 0, 0, 1, 1, 2], [0], [0]>} : vector<2x16x8xf32>, vector<2x8x32xf32>, vector<2x16x32xf32> -> vector<2x16x32xf32>
    "tpu.trace_stop"() : () -> ()
    %c0_15 = arith.constant 0 : index
    %c0_16 = arith.constant 0 : index
    %34 = vector.load %arg5[%c0_15, %c0_16] : memref<16x1xf32, #tpu.memory_space<vmem>>, vector<16x1xf32>
    %35 = vector.shape_cast %34 : vector<16x1xf32> to vector<1x16x1xf32>
    %36 = vector.broadcast %35 : vector<1x16x1xf32> to vector<2x16x32xf32>
    %37 = arith.addf %33, %36 : vector<2x16x32xf32>
    %cst_17 = arith.constant 5.000000e-01 : f32
    %38 = vector.broadcast %cst_17 : f32 to vector<2x16x32xf32>
    %39 = arith.mulf %38, %37 : vector<2x16x32xf32>
    %cst_18 = arith.constant 0.707106769 : f32
    %40 = vector.broadcast %cst_18 : f32 to vector<2x16x32xf32>
    %41 = arith.mulf %37, %40 : vector<2x16x32xf32>
    %42 = math.erf %41 : vector<2x16x32xf32>
    %cst_19 = arith.constant 1.000000e+00 : f32
    %43 = vector.broadcast %cst_19 : f32 to vector<2x16x32xf32>
    %44 = arith.addf %43, %42 : vector<2x16x32xf32>
    %45 = arith.mulf %39, %44 : vector<2x16x32xf32>
    "tpu.trace_start"() <{level = 10 : i32, message = "bph,bhd->bpd"}> : () -> ()
    %cst_20 = arith.constant dense<0.000000e+00> : vector<2x8x32xf32>
    %46 = tpu.matmul %32, %45, %cst_20 {dimension_numbers = #tpu.dot_dimension_numbers<[2], [1], [1], [2], [0, 0, 0, 1, 1, 2], [0], [0]>} : vector<2x8x16xf32>, vector<2x16x32xf32>, vector<2x8x32xf32> -> vector<2x8x32xf32>
    "tpu.trace_stop"() : () -> ()
    %c0_21 = arith.constant 0 : index
    %c0_22 = arith.constant 0 : index
    %47 = vector.load %arg7[%c0_21, %c0_22] : memref<8x1xf32, #tpu.memory_space<vmem>>, vector<8x1xf32>
    %48 = vector.shape_cast %47 : vector<8x1xf32> to vector<1x8x1xf32>
    %49 = vector.broadcast %48 : vector<1x8x1xf32> to vector<2x8x32xf32>
    %50 = arith.addf %46, %49 : vector<2x8x32xf32>
    %51 = arith.addf %0, %50 : vector<2x8x32xf32>
    %52 = vector.shape_cast %51 : vector<2x8x32xf32> to vector<16x32xf32>
    %c0_23 = arith.constant 0 : index
    %c0_24 = arith.constant 0 : index
    %53 = vector.load %arg8[%c0_23, %c0_24] : memref<1x32xf32, #tpu.memory_space<vmem>>, vector<1x32xf32>
    %c0_25 = arith.constant 0 : index
    %c0_26 = arith.constant 0 : index
    %54 = vector.load %arg9[%c0_25, %c0_26] : memref<1x32xf32, #tpu.memory_space<vmem>>, vector<1x32xf32>
    %cst_27 = arith.constant dense<0.000000e+00> : vector<16xf32>
    %55 = vector.multi_reduction <add>, %52, %cst_27 [1] : vector<16x32xf32> to vector<16xf32>
    %56 = vector.shape_cast %55 : vector<16xf32> to vector<16x1xf32>
    %cst_28 = arith.constant 3.200000e+01 : f32
    %57 = vector.broadcast %cst_28 : f32 to vector<16x1xf32>
    %58 = arith.divf %56, %57 : vector<16x1xf32>
    %59 = vector.broadcast %58 : vector<16x1xf32> to vector<16x32xf32>
    %60 = arith.subf %52, %59 : vector<16x32xf32>
    %61 = arith.mulf %60, %60 : vector<16x32xf32>
    %cst_29 = arith.constant dense<0.000000e+00> : vector<16xf32>
    %62 = vector.multi_reduction <add>, %61, %cst_29 [1] : vector<16x32xf32> to vector<16xf32>
    %63 = vector.shape_cast %62 : vector<16xf32> to vector<16x1xf32>
    %cst_30 = arith.constant 3.200000e+01 : f32
    %64 = vector.broadcast %cst_30 : f32 to vector<16x1xf32>
    %65 = arith.divf %63, %64 : vector<16x1xf32>
    %66 = vector.broadcast %58 : vector<16x1xf32> to vector<16x32xf32>
    %67 = arith.subf %52, %66 : vector<16x32xf32>
    %cst_31 = arith.constant 9.99999974E-6 : f32
    %68 = vector.broadcast %cst_31 : f32 to vector<16x1xf32>
    %69 = arith.addf %65, %68 : vector<16x1xf32>
    %70 = math.rsqrt %69 : vector<16x1xf32>
    %71 = vector.broadcast %70 : vector<16x1xf32> to vector<16x32xf32>
    %72 = arith.mulf %67, %71 : vector<16x32xf32>
    %73 = vector.broadcast %53 : vector<1x32xf32> to vector<16x32xf32>
    %74 = arith.mulf %72, %73 : vector<16x32xf32>
    %75 = vector.broadcast %54 : vector<1x32xf32> to vector<16x32xf32>
    %76 = arith.addf %74, %75 : vector<16x32xf32>
    %c0_32 = arith.constant 0 : index
    %c0_33 = arith.constant 0 : index
    %77 = vector.load %arg10[%c0_32, %c0_33] : memref<32x128xf32, #tpu.memory_space<vmem>>, vector<32x128xf32>
    %cst_34 = arith.constant dense<0.000000e+00> : vector<16x128xf32>
    %78 = tpu.matmul %76, %77, %cst_34 {dimension_numbers = #tpu.dot_dimension_numbers<[1], [0], [0], [1], [0, 0, 1, 1], [], []>} : vector<16x32xf32>, vector<32x128xf32>, vector<16x128xf32> -> vector<16x128xf32>
    %c0_35 = arith.constant 0 : index
    %c0_36 = arith.constant 0 : index
    %79 = vector.load %arg11[%c0_35, %c0_36] : memref<1x128xf32, #tpu.memory_space<vmem>>, vector<1x128xf32>
    %80 = vector.broadcast %79 : vector<1x128xf32> to vector<16x128xf32>
    %81 = arith.addf %78, %80 : vector<16x128xf32>
    %cst_37 = arith.constant 5.000000e-01 : f32
    %82 = vector.broadcast %cst_37 : f32 to vector<16x128xf32>
    %83 = arith.mulf %82, %81 : vector<16x128xf32>
    %cst_38 = arith.constant 0.707106769 : f32
    %84 = vector.broadcast %cst_38 : f32 to vector<16x128xf32>
    %85 = arith.mulf %81, %84 : vector<16x128xf32>
    %86 = math.erf %85 : vector<16x128xf32>
    %cst_39 = arith.constant 1.000000e+00 : f32
    %87 = vector.broadcast %cst_39 : f32 to vector<16x128xf32>
    %88 = arith.addf %87, %86 : vector<16x128xf32>
    %89 = arith.mulf %83, %88 : vector<16x128xf32>
    %c0_40 = arith.constant 0 : index
    %c0_41 = arith.constant 0 : index
    %90 = vector.load %arg12[%c0_40, %c0_41] : memref<128x32xf32, #tpu.memory_space<vmem>>, vector<128x32xf32>
    %cst_42 = arith.constant dense<0.000000e+00> : vector<16x32xf32>
    %91 = tpu.matmul %89, %90, %cst_42 {dimension_numbers = #tpu.dot_dimension_numbers<[1], [0], [0], [1], [0, 0, 1, 1], [], []>} : vector<16x128xf32>, vector<128x32xf32>, vector<16x32xf32> -> vector<16x32xf32>
    %c0_43 = arith.constant 0 : index
    %c0_44 = arith.constant 0 : index
    %92 = vector.load %arg13[%c0_43, %c0_44] : memref<1x32xf32, #tpu.memory_space<vmem>>, vector<1x32xf32>
    %93 = vector.broadcast %92 : vector<1x32xf32> to vector<16x32xf32>
    %94 = arith.addf %91, %93 : vector<16x32xf32>
    %95 = arith.addf %52, %94 : vector<16x32xf32>
    %96 = vector.shape_cast %95 : vector<16x32xf32> to vector<2x8x32xf32>
    %c0_45 = arith.constant 0 : index
    %c0_46 = arith.constant 0 : index
    %c0_47 = arith.constant 0 : index
    %97 = vector.load %arg14[%c0_45, %c0_46, %c0_47] : memref<2x8x32xf32, #tpu.memory_space<vmem>>, vector<2x8x32xf32>
    tpu.vector_store %arg14[%c0_45, %c0_46, %c0_47], %96 {strides = array<i32>} : memref<2x8x32xf32, #tpu.memory_space<vmem>>, vector<2x8x32xf32>,
    return
  }
  func.func @transform_0(%arg0: i32) -> (i32, i32, i32) {
    %c0_i32 = arith.constant 0 : i32
    %c0_i32_0 = arith.constant 0 : i32
    %c0_i32_1 = arith.constant 0 : i32
    return %arg0, %c0_i32, %c0_i32_0 : i32, i32, i32
  }
  func.func @transform_1(%arg0: i32) -> (i32, i32) {
    %c0_i32 = arith.constant 0 : i32
    %c0_i32_0 = arith.constant 0 : i32
    %c0_i32_1 = arith.constant 0 : i32
    return %c0_i32, %c0_i32_0 : i32, i32
  }
  func.func @transform_2(%arg0: i32) -> (i32, i32) {
    %c0_i32 = arith.constant 0 : i32
    %c0_i32_0 = arith.constant 0 : i32
    %c0_i32_1 = arith.constant 0 : i32
    return %c0_i32, %c0_i32_0 : i32, i32
  }
  func.func @transform_3(%arg0: i32) -> (i32, i32) {
    %c0_i32 = arith.constant 0 : i32
    %c0_i32_0 = arith.constant 0 : i32
    %c0_i32_1 = arith.constant 0 : i32
    return %c0_i32, %c0_i32_0 : i32, i32
  }
  func.func @transform_4(%arg0: i32) -> (i32, i32) {
    %c0_i32 = arith.constant 0 : i32
    %c0_i32_0 = arith.constant 0 : i32
    %c0_i32_1 = arith.constant 0 : i32
    return %c0_i32, %c0_i32_0 : i32, i32
  }
  func.func @transform_5(%arg0: i32) -> (i32, i32) {
    %c0_i32 = arith.constant 0 : i32
    %c0_i32_0 = arith.constant 0 : i32
    %c0_i32_1 = arith.constant 0 : i32
    return %c0_i32, %c0_i32_0 : i32, i32
  }
  func.func @transform_6(%arg0: i32) -> (i32, i32) {
    %c0_i32 = arith.constant 0 : i32
    %c0_i32_0 = arith.constant 0 : i32
    %c0_i32_1 = arith.constant 0 : i32
    return %c0_i32, %c0_i32_0 : i32, i32
  }
  func.func @transform_7(%arg0: i32) -> (i32, i32) {
    %c0_i32 = arith.constant 0 : i32
    %c0_i32_0 = arith.constant 0 : i32
    %c0_i32_1 = arith.constant 0 : i32
    return %c0_i32, %c0_i32_0 : i32, i32
  }
  func.func @transform_8(%arg0: i32) -> (i32, i32) {
    %c0_i32 = arith.constant 0 : i32
    %c0_i32_0 = arith.constant 0 : i32
    %c0_i32_1 = arith.constant 0 : i32
    return %c0_i32, %c0_i32_0 : i32, i32
  }
  func.func @transform_9(%arg0: i32) -> (i32, i32) {
    %c0_i32 = arith.constant 0 : i32
    %c0_i32_0 = arith.constant 0 : i32
    %c0_i32_1 = arith.constant 0 : i32
    return %c0_i32, %c0_i32_0 : i32, i32
  }
  func.func @transform_10(%arg0: i32) -> (i32, i32) {
    %c0_i32 = arith.constant 0 : i32
    %c0_i32_0 = arith.constant 0 : i32
    %c0_i32_1 = arith.constant 0 : i32
    return %c0_i32, %c0_i32_0 : i32, i32
  }
  func.func @transform_11(%arg0: i32) -> (i32, i32) {
    %c0_i32 = arith.constant 0 : i32
    %c0_i32_0 = arith.constant 0 : i32
    %c0_i32_1 = arith.constant 0 : i32
    return %c0_i32, %c0_i32_0 : i32, i32
  }
  func.func @transform_12(%arg0: i32) -> (i32, i32) {
    %c0_i32 = arith.constant 0 : i32
    %c0_i32_0 = arith.constant 0 : i32
    %c0_i32_1 = arith.constant 0 : i32
    return %c0_i32, %c0_i32_0 : i32, i32
  }
  func.func @transform_13(%arg0: i32) -> (i32, i32, i32) {
    %c0_i32 = arith.constant 0 : i32
    %c0_i32_0 = arith.constant 0 : i32
    %c0_i32_1 = arith.constant 0 : i32
    return %arg0, %c0_i32, %c0_i32_0 : i32, i32, i32
  }
}

</mosaic_0001>

<bundles_post_ra>
// kernel: tpu_custom_call.1
= control target key start
LH: loop header
LB: loop body
LE: loop exit
PB: predicated region body
PF: predicated region fallthrough
CT: control target
= control target key end

     0   :  { %vm49_vm0 = vcmask 261120   ;;  %s1149_s0 = inlined_call_operand.vmem [shape: f32[2,8,32], index: 0, kind: input, shape index: {}]   ;;  %s1150_s1 = inlined_call_operand.vmem [shape: f32[1,32], index: 1, kind: input, shape index: {}]   ;;  %s1151_s2 = inlined_call_operand.vmem [shape: f32[1,32], index: 2, kind: input, shape index: {}]   ;;  %s1152_s3 = inlined_call_operand.vmem [shape: f32[16,8], index: 3, kind: input, shape index: {}]   ;;  %s1153_s4 = inlined_call_operand.vmem [shape: f32[16,1], index: 4, kind: input, shape index: {}]   ;;  %s1154_s5 = inlined_call_operand.vmem [shape: f32[8,16], index: 5, kind: input, shape index: {}]   ;;  %s1155_s6 = inlined_call_operand.vmem [shape: f32[8,1], index: 6, kind: input, shape index: {}]   ;;  %s1156_s7 = inlined_call_operand.vmem [shape: f32[1,32], index: 7, kind: input, shape index: {}]   ;;  %s1157_s8 = inlined_call_operand.vmem [shape: f32[1,32], index: 8, kind: input, shape index: {}]   ;;  %s1158_s9 = inlined_call_operand.vmem [shape: f32[32,128], index: 9, kind: input, shape index: {}]   ;;  %s1159_s10 = inlined_call_operand.vmem [shape: f32[1,128], index: 10, kind: input, shape index: {}]   ;;  %s1160_s11 = inlined_call_operand.vmem [shape: f32[128,32], index: 11, kind: input, shape index: {}]   ;;  %s1161_s12 = inlined_call_operand.vmem [shape: f32[1,32], index: 12, kind: input, shape index: {}]   ;;  %s1162_s13 = inlined_call_operand.hbm [shape: f32[2,8,32], index: 13, kind: output, shape index: {}]  }
   0x1   :  { %v1000_v0 = vld [vmem:[%s1149_s0] sm:$0xff]  ;;  %v1005_v1 = vld [vmem:[%s1149_s0 + $0x8] sm:$0xff] }
   0x2   :  { %18 = vsyncpa [#allocation3], 0  ;;  %v50_v2 = vsel %vm49_vm0, %v1000_v0, 0.0  ;;  %v53_v3 = vsel %vm49_vm0, %v1005_v1, 0.0  ;;  %v93_v14 = vld [vmem:[%s1152_s3] sm:$0xff]  ;;  %vm108_vm1 = vcmask 64512  }
   0x3   :  { %51 = vadd.xlane.f32.xlu0 %v50_v2  ;;  %753 = vmatprep.mubr.msk.f32.mxu0 %vm108_vm1, %v93_v14  ;;  %v97_v15 = vld [vmem:[%s1153_s4 + $0x8] sm:$0xff]  ;;  %v96_v16 = vld [vmem:[%s1153_s4] sm:$0xff]  ;;  %v920_v17 = vmov 0   ;;  %v921_v36 = vmov 0.0|0.0   ;;  %vm922_vm2 = vmmov 0   ;;  %v923_v37 = vmov 0.0  }
   0x4   :  { %875 = vset.pattern.permute.xlu1 %v920_v17  ;;  %874 = vset.pattern.permute.xlu0 %v920_v17  ;;  %v285_v18 = vld [vmem:[%s1155_s6] sm:$0xff]  ;;  %v94_v33 = vld [vmem:[%s1152_s3 + $0x8] sm:$0xff]  ;;  %vm291_vm3 = vcmask 130048   ;;  %s924_s20 = smov [#allocation2]  }
   0x5   :  { %v701_v26 = vld [vmem:[%s1150_s1] ss:$0 sm:$0xff]  ;;  %s690_s21 = sshll.u32 %s924_s20, 4  ;;  %s691_s21 = int_to_ptr.vmem [resolvable:$true] %s690_s21 }
   0x6   :  { %v702_v28 = vld [vmem:[%s1151_s2] ss:$0 sm:$0xff]  ;;  %s896_s6 = scalar_lea.vmem %s691_s21, 256  ;;  %p901_p1 = scmp.lt.s32.totalorder %s691_s21, %s691_s21 }
   0x7   :  { %54 = vadd.xlane.f32.xlu0 %v53_v3  ;;  %p897_p0 = scmp.ne.s32.totalorder %s691_s21, %s896_s6  ;;  %p902_p2 = scmp.lt.s32.totalorder %s896_s6, %s896_s6 }
   0x9   :  { %p903_p3 = por %p902_p2, %p901_p1 }
   0xb   :  { %p904_p4 = pnand %p903_p3, %p897_p0 }
  0x1d   :  { %100 = vperm.xlu0 %874, %v96_v16  }
  0x90   :  { %v52_v4 = vpop.xlane.xlu0 %51 }
  0x91   :  { %v57_v5 = vmul.f32 0.03125, %v52_v4 }
  0x93   :  { %v59_v6 = vsub.f32 %v1000_v0, %v57_v5 }
  0x94   :  { %v55_v7 = vpop.xlane.xlu0 %54 }
  0x95   :  { %v58_v8 = vmul.f32 0.03125, %v55_v7  ;;  %v61_v9 = vmul.f32 %v59_v6, %v59_v6  ;;  %v95_v7 = vld [vmem:[%s1154_s5] sm:$0xff] }
  0x97   :  { %v60_v10 = vsub.f32 %v1005_v1, %v58_v8  ;;  %v63_v11 = vsel %vm49_vm0, %v61_v9, 0.0 }
  0x98   :  { %64 = vadd.xlane.f32.xlu1 %v63_v11 }
  0x99   :  { %v62_v12 = vmul.f32 %v60_v10, %v60_v10 }
  0x9b   :  { %v66_v13 = vsel %vm49_vm0, %v62_v12, 0.0 }
  0x9c   :  { %67 = vadd.xlane.f32.xlu1 %v66_v13  ;;  %v101_v38 = vpop.permute.xlu0 %100 }
  0xad   :  { %105 = vperm.xlu1 %875, %v97_v15  }
  0xb1   :  { %288 = vperm.xlu1 %875, %v285_v18  }
 0x125   :  { %v65_v19 = vpop.xlane.xlu1 %64 }
 0x126   :  { %v69_v20 = vmul.f32 0.03125, %v65_v19 }
 0x128   :  { %v71_v21 = vadd.f32 1e-05, %v69_v20 }
 0x129   :  { %v68_v22 = vpop.xlane.xlu1 %67 }
 0x12a   :  { %876 = vrsqrt.f32 %v71_v21  ;;  %v70_v23 = vmul.f32 0.03125, %v68_v22 }
 0x12c   :  { %v72_v24 = vadd.f32 1e-05, %v70_v23 }
 0x12d   :  { %v106_v39 = vpop.permute.xlu1 %105 }
 0x12e   :  { %878 = vrsqrt.f32 %v72_v24 }
 0x131   :  { %v289_v9 = vpop.permute.xlu1 %288 }
 0x134   :  { %v877_v25 = vpop.eup %876 }
 0x135   :  { %v75_v27 = vmul.f32 %v877_v25, %v59_v6 }
 0x137   :  { %v83_v29 = vmul.f32 %v701_v26, %v75_v27 }
 0x138   :  { %v879_v30 = vpop.eup %878 }
 0x139   :  { %v76_v31 = vmul.f32 %v879_v30, %v60_v10  ;;  %v91_v32 = vadd.f32 %v702_v28, %v83_v29  ;;  %v482_v29 = vld [vmem:[%s1158_s9 + $0x8] sm:$0xff] }
 0x13b   :  { %v84_v34 = vmul.f32 %v701_v26, %v76_v31  ;;  %751 = vmatprep.subr.mxu0 %v91_v32  ;;  %v483_v31 = vld [vmem:[%s1158_s9 + $0x10] sm:$0xff] }
 0x13c   :  { %752 = vmatpush3.msra.mxu0 %v91_v32  ;;  %v484_v32 = vld [vmem:[%s1158_s9 + $0x18] sm:$0xff] }
 0x13d   :  { %v92_v35 = vadd.f32 %v702_v28, %v84_v34  ;;  %754 = vmatmul.mubr.msk.f32.vlgmr.msra.gmra.mrb[0].mxu0 %vm108_vm1, %v94_v33  ;;  %v481_v28 = vld [vmem:[%s1158_s9] sm:$0xff] }
 0x13e   :  { %758 = vmatprep.mubr.msk.f32.mxu0 %vm108_vm1, %v93_v14  ;;  %v827_v30 = vpack.c.bf16 %v482_v29, %v481_v28  ;;  %v583_v34 = vld [vmem:[%s1160_s11] sm:$0xff] }
 0x13f   :  { %756 = vmatprep.subr.mxu0 %v92_v35 }
 0x140   :  { %757 = vmatpush3.msra.mxu0 %v92_v35  ;;  %v584_v35 = vld [vmem:[%s1160_s11 + $0x8] sm:$0xff] }
 0x141   :  { %759 = vmatmul.mubr.msk.f32.vlgmr.msra.gmra.mrb[2].mxu0 %vm108_vm1, %v94_v33  ;;  %821 = vmatprep.subr.bf16.mxu0 %v921_v36  ;;  %v831_v33 = vpack.c.bf16 %v484_v32, %v483_v31 }
 0x142   :  { %765 = vmatprep.mubr.msk.f32.mxu0 %vm922_vm2, %v923_v37 }
 0x210   :  { %v755_v40 = vpop.f32.mrb[0].mxu0 }
 0x211   :  { %v187_v41 = vadd.f32 %v755_v40, %v106_v39  ;;  %v181_v42 = vpop.f32.mrb[1].mxu0  ;;  %v587_v40 = vld [vmem:[%s1160_s11 + $0x20] sm:$0xff] }
 0x212   :  { %v182_v43 = vadd.f32 %v181_v42, %v101_v38 }
 0x213   :  { %v270_v44 = vmul.f32 0.70710677, %v187_v41  ;;  %v266_v54 = vmul.f32 0.5, %v187_v41  ;;  %v588_v41 = vld [vmem:[%s1160_s11 + $0x28] sm:$0xff] }
 0x214   :  { %v269_v45 = vmul.f32 0.70710677, %v182_v43  ;;  %v760_v46 = vpop.f32.mrb[2].mxu0  ;;  %v265_v56 = vmul.f32 0.5, %v182_v43  ;;  %v843_v42 = vpack.c.bf16 %v588_v41, %v587_v40 }
 0x215   :  { %880 = verf.f32 %v270_v44  ;;  %v262_v47 = vadd.f32 %v760_v46, %v106_v39  ;;  %v256_v48 = vpop.f32.mrb[3].mxu0 }
 0x216   :  { %882 = verf.f32 %v269_v45  ;;  %v257_v49 = vadd.f32 %v256_v48, %v101_v38  ;;  %v586_v38 = vld [vmem:[%s1160_s11 + $0x18] sm:$0xff] }
 0x217   :  { %v272_v50 = vmul.f32 0.70710677, %v262_v47  ;;  %v268_v62 = vmul.f32 0.5, %v262_v47 }
 0x218   :  { %v271_v51 = vmul.f32 0.70710677, %v257_v49  ;;  %v267_v2 = vmul.f32 0.5, %v257_v49 }
 0x219   :  { %884 = verf.f32 %v272_v50  ;;  %v709_v50 = vld [vmem:[%s1156_s7] ss:$0 sm:$0xff] }
 0x21a   :  { %886 = verf.f32 %v271_v51 }
 0x21f   :  { %v881_v52 = vpop.eup %880 }
 0x220   :  { %v883_v53 = vpop.eup %882  ;;  %v278_v55 = vadd.f32 1.0, %v881_v52  ;;  %v710_v52 = vld [vmem:[%s1157_s8] ss:$0 sm:$0xff] }
 0x221   :  { %v277_v57 = vadd.f32 1.0, %v883_v53 }
 0x222   :  { %v282_v58 = vmul.f32 %v278_v55, %v266_v54 }
 0x223   :  { %v885_v59 = vpop.eup %884  ;;  %v281_v60 = vmul.f32 %v277_v57, %v265_v56 }
 0x224   :  { %v887_v61 = vpop.eup %886  ;;  %v280_v63 = vadd.f32 1.0, %v885_v59  ;;  %v589_v59 = vld [vmem:[%s1160_s11 + $0x30] sm:$0xff] }
 0x225   :  { %v279_v3 = vadd.f32 1.0, %v887_v61  ;;  %v822_v4 = vpack.c.bf16 %v282_v58, %v281_v60  ;;  %v590_v60 = vld [vmem:[%s1160_s11 + $0x38] sm:$0xff] }
 0x226   :  { %v284_v5 = vmul.f32 %v280_v63, %v268_v62  ;;  %v847_v61 = vpack.c.bf16 %v590_v60, %v589_v59  ;;  %v591_v62 = vld [vmem:[%s1160_s11 + $0x40] sm:$0xff]  ;;  %v592_v63 = vld [vmem:[%s1160_s11 + $0x48] sm:$0xff] }
 0x227   :  { %v283_v6 = vmul.f32 %v279_v3, %v267_v2  ;;  %823 = vmatpush3.bf16.msra.mxu0 %v822_v4  ;;  %v851_v2 = vpack.c.bf16 %v592_v63, %v591_v62  ;;  %v593_v3 = vld [vmem:[%s1160_s11 + $0x50] sm:$0xff]  ;;  %v594_v4 = vld [vmem:[%s1160_s11 + $0x58] sm:$0xff] }
 0x228   :  { %824 = vmatprep.subr.bf16.mxu0 %v921_v36  ;;  %v585_v36 = vld [vmem:[%s1160_s11 + $0x10] sm:$0xff] }
 0x229   :  { %v825_v8 = vpack.c.bf16 %v284_v5, %v283_v6  ;;  %v839_v39 = vpack.c.bf16 %v586_v38, %v585_v36  ;;  %v855_v5 = vpack.c.bf16 %v594_v4, %v593_v3  ;;  %v595_v6 = vld [vmem:[%s1160_s11 + $0x60] sm:$0xff] }
 0x22a   :  { %766 = vmatmul.mubr.msk.f32.vlgmr.msra.gmra.mrb[4].mxu0 %vm291_vm3, %v95_v7 }
 0x22b   :  { %826 = vmatpush3.bf16.msra.mxu0 %v825_v8  ;;  %772 = vmatprep.mubr.msk.f32.mxu0 %vm922_vm2, %v923_v37  ;;  %v835_v37 = vpack.c.bf16 %v584_v35, %v583_v34 }
 0x22c   :  { %828 = vmatprep.subr.bf16.mxu0 %v827_v30 }
 0x22d   :  { %836 = vmatprep.subr.bf16.mxu1 %v835_v37 }
 0x22e   :  { %773 = vmatmul.mubr.msk.f32.vlgmr.msra.gmra.mrb[6].mxu0 %vm291_vm3, %v95_v7  ;;  %838 = vmatpush3.bf16.msra.mxu1 %v835_v37  ;;  %v596_v7 = vld [vmem:[%s1160_s11 + $0x68] sm:$0xff] }
 0x22f   :  { %830 = vmatpush3.bf16.msra.mxu0 %v827_v30  ;;  %840 = vmatprep.subr.bf16.mxu1 %v839_v39  ;;  %v859_v8 = vpack.c.bf16 %v596_v7, %v595_v6 }
 0x230   :  { %832 = vmatprep.subr.bf16.mxu0 %v831_v33 }
 0x232   :  { %842 = vmatpush3.bf16.msra.mxu1 %v839_v39 }
 0x233   :  { %834 = vmatpush3.bf16.msra.mxu0 %v831_v33  ;;  %844 = vmatprep.subr.bf16.mxu1 %v843_v42 }
 0x236   :  { %846 = vmatpush3.bf16.msra.mxu1 %v843_v42 }
 0x237   :  { %848 = vmatprep.subr.bf16.mxu1 %v847_v61 }
 0x23a   :  { %850 = vmatpush3.bf16.msra.mxu1 %v847_v61 }
 0x23b   :  { %852 = vmatprep.subr.bf16.mxu1 %v851_v2 }
 0x23e   :  { %854 = vmatpush3.bf16.msra.mxu1 %v851_v2 }
 0x23f   :  { %856 = vmatprep.subr.bf16.mxu1 %v855_v5 }
 0x242   :  { %858 = vmatpush3.bf16.msra.mxu1 %v855_v5 }
 0x243   :  { %860 = vmatprep.subr.bf16.mxu1 %v859_v8 }
 0x246   :  { %862 = vmatpush3.bf16.msra.mxu1 %v859_v8 }
 0x2fd   :  { %v361_v10 = vpop.f32.mrb[4].mxu0 }
 0x2fe   :  { %v362_v11 = vadd.f32 %v361_v10, %v289_v9  ;;  %v767_v12 = vpop.f32.mrb[5].mxu0  ;;  %v598_v10 = vld [vmem:[%s1160_s11 + $0x78] sm:$0xff] }
 0x2ff   :  { %v711_v12 = vld [vmem:[%s1159_s10] ss:$0 sm:$0xff] }
 0x300   :  { %v1046_v13 = vadd.f32 %v362_v11, %v1000_v0 }
 0x301   :  { %v431_v14 = vpop.f32.mrb[6].mxu0 }
 0x302   :  { %v432_v15 = vadd.f32 %v431_v14, %v289_v9  ;;  %v439_v16 = vsel %vm49_vm0, %v1046_v13, 0.0  ;;  %v774_v17 = vpop.f32.mrb[7].mxu0  ;;  %v597_v9 = vld [vmem:[%s1160_s11 + $0x70] sm:$0xff] }
 0x303   :  { %440 = vadd.xlane.f32.xlu1 %v439_v16  ;;  %v863_v11 = vpack.c.bf16 %v598_v10, %v597_v9 }
 0x304   :  { %v1051_v18 = vadd.f32 %v432_v15, %v1005_v1 }
 0x305   :  { %864 = vmatprep.subr.bf16.mxu1 %v863_v11 }
 0x306   :  { %v442_v19 = vsel %vm49_vm0, %v1051_v18, 0.0  ;;  %866 = vmatpush3.bf16.msra.mxu1 %v863_v11 }
 0x307   :  { %443 = vadd.xlane.f32.xlu0 %v442_v19 }
 0x390   :  { %v441_v20 = vpop.xlane.xlu1 %440 }
 0x391   :  { %v445_v21 = vmul.f32 0.03125, %v441_v20 }
 0x393   :  { %v447_v22 = vsub.f32 %v1046_v13, %v445_v21 }
 0x394   :  { %v444_v0 = vpop.xlane.xlu0 %443 }
 0x395   :  { %v446_v23 = vmul.f32 0.03125, %v444_v0  ;;  %v449_v24 = vmul.f32 %v447_v22, %v447_v22 }
 0x397   :  { %v448_v25 = vsub.f32 %v1051_v18, %v446_v23  ;;  %v451_v26 = vsel %vm49_vm0, %v449_v24, 0.0 }
 0x398   :  { %452 = vadd.xlane.f32.xlu1 %v451_v26 }
 0x399   :  { %v450_v27 = vmul.f32 %v448_v25, %v448_v25 }
 0x39b   :  { %v454_v1 = vsel %vm49_vm0, %v450_v27, 0.0 }
 0x39c   :  { %455 = vadd.xlane.f32.xlu1 %v454_v1  ;;  %v714_v1 = vld [vmem:[%s1161_s12] ss:$0 sm:$0xff] }
 0x425   :  { %v453_v43 = vpop.xlane.xlu1 %452 }
 0x426   :  { %v457_v44 = vmul.f32 0.03125, %v453_v43 }
 0x428   :  { %v459_v45 = vadd.f32 1e-05, %v457_v44 }
 0x429   :  { %v456_v46 = vpop.xlane.xlu1 %455 }
 0x42a   :  { %888 = vrsqrt.f32 %v459_v45  ;;  %v458_v47 = vmul.f32 0.03125, %v456_v46 }
 0x42c   :  { %v460_v48 = vadd.f32 1e-05, %v458_v47 }
 0x42e   :  { %890 = vrsqrt.f32 %v460_v48 }
 0x434   :  { %v889_v49 = vpop.eup %888 }
 0x435   :  { %v463_v51 = vmul.f32 %v889_v49, %v447_v22 }
 0x437   :  { %v471_v53 = vmul.f32 %v709_v50, %v463_v51 }
 0x438   :  { %v891_v54 = vpop.eup %890 }
 0x439   :  { %v464_v55 = vmul.f32 %v891_v54, %v448_v25  ;;  %v479_v56 = vadd.f32 %v710_v52, %v471_v53 }
 0x43b   :  { %v472_v57 = vmul.f32 %v709_v50, %v464_v55  ;;  %783 = vmatprep.mubr.msk.f32.mxu0 %vm49_vm0, %v479_v56 }
 0x43d   :  { %v480_v58 = vadd.f32 %v710_v52, %v472_v57 }
 0x43f   :  { %784 = vmatmul.mubr.msk.f32.vlgmr.msra.gmra.mrb[8].mxu0 %vm49_vm0, %v480_v58 }
 0x512   :  { %v785_v14 = vpop.f32.mrb[8].mxu0 }
 0x513   :  { %v570_v15 = vadd.f32 %v785_v14, %v711_v12  ;;  %v564_v16 = vpop.f32.mrb[9].mxu0 }
 0x514   :  { %v565_v17 = vadd.f32 %v711_v12, %v564_v16 }
 0x515   :  { %v576_v19 = vmul.f32 0.70710677, %v570_v15  ;;  %v574_v25 = vmul.f32 0.5, %v570_v15 }
 0x516   :  { %v575_v20 = vmul.f32 0.70710677, %v565_v17  ;;  %v573_v23 = vmul.f32 0.5, %v565_v17 }
 0x517   :  { %892 = verf.f32 %v576_v19 }
 0x518   :  { %894 = verf.f32 %v575_v20 }
 0x521   :  { %v893_v21 = vpop.eup %892 }
 0x522   :  { %v895_v22 = vpop.eup %894  ;;  %v580_v0 = vadd.f32 1.0, %v893_v21 }
 0x523   :  { %v579_v24 = vadd.f32 1.0, %v895_v22 }
 0x524   :  { %v582_v27 = vmul.f32 %v580_v0, %v574_v25 }
 0x525   :  { %v581_v26 = vmul.f32 %v579_v24, %v573_v23 }
 0x527   :  { %818 = vmatprep.mubr.f32.mxu1 %v581_v26 }
 0x528   :  { %819 = vmatmul.mubr.f32.vlgmr.msra.gmra.mrb[0].mxu1 %v582_v27 }
 0x5fb   :  { %v820_v28 = vpop.f32.mrb[0].mxu1 }
 0x5fc   :  { %v678_v29 = vadd.f32 %v820_v28, %v714_v1  ;;  %v672_v30 = vpop.f32.mrb[1].mxu1 }
 0x5fd   :  { %v673_v31 = vadd.f32 %v714_v1, %v672_v30 }
 0x5fe   :  { %v682_v32 = vadd.f32 %v678_v29, %v1051_v18 }
 0x5ff   :  { %v681_v33 = vadd.f32 %v673_v31, %v1046_v13 }
 0x600   :  { %684 = vst.msk [vmem:[#allocation2 + $0x8] sm:$0xff] %vm49_vm0, %v682_v32 }
 0x601   :  { %683 = vst.msk [vmem:[#allocation2] sm:$0xff] %vm49_vm0, %v681_v33 }
 0x602   :  { %907 = shalt.err (!%p904_p4)
}
 0x603   :  { %s908_s1 = scalar_lea.hbm %s1162_s13, 256 }
 0x604   :  { %p909_p5 = scmp.ne.s32.totalorder %s1162_s13, %s908_s1  ;;  %p912_p6 = scmp.lt.u32.totalorder %s908_s1, %s1162_s13 }
 0x606   :  { %p914_p7 = pnand %p912_p6, %p909_p5 }
 0x608   :  { %917 = shalt.err (!%p914_p7)
}
 0x609   :  { %s925_s8 = smov 128   ;;  %s926_s23 = smov 8  }
 0x60a   :  { %696 = dma.vmem_to_hbm [thread:$0]  %s691_s21, 256, %s1162_s13, [#allocation3], %s925_s8, %s925_s8, %s926_s23  }
 0x60b   :  { %918 = dma.done.wait [#allocation3], 256  }
 0x60c   :  { %919 = vsyncadd [#allocation3], 4294967040 }
 0x60d   :  { %700 = vsyncpa [#allocation3], 1 }

</bundles_post_ra>
